<compile_context>
chip_gen: v7x
topology: tpu7x:2x2x1
jax: 0.10.0
libtpu: 0.0.40
codegen_flags: <defaults>
</compile_context>

<pallas_src>
import jax
import jax.numpy as jnp
from jax.experimental import pallas as pl
from jax.experimental.pallas import tpu as pltpu


def _make_twinq_kernel(q_type, compute_dtype):
    """Build the fused twin-Q kernel (min for 'reward', max for 'cost')."""

    def kernel(st_ref, ac_ref, w1s_ref, w1a_ref, w2_ref, w3_ref, b_ref,
               out_ref):
        # b_ref: (2H, 3) f32 -> columns are [b1 | b2 | b3-padded]
        b1 = b_ref[:, 0:1]                    # (2H, 1)
        b2 = b_ref[:, 1:2]                    # (2H, 1)
        b3 = b_ref[0:2, 2:3]                  # (2, 1)

        # Layer 1: W1^T @ [state; action]^T  -> (2H, tb), f32 accumulation.
        h = (jnp.dot(w1s_ref[...], st_ref[...],
                     preferred_element_type=jnp.float32)
             + jnp.dot(w1a_ref[...], ac_ref[...],
                       preferred_element_type=jnp.float32)
             + b1)
        h = jnp.maximum(h, 0.0)               # ReLU in f32 (v5e-safe VPU path)

        # Layer 2: block-diagonal W2^T keeps the two heads independent.
        h = jnp.dot(w2_ref[...], h.astype(compute_dtype),
                    preferred_element_type=jnp.float32) + b2
        h = jnp.maximum(h, 0.0)

        # Layer 3: packed W3^T -> (2, tb): row 0 = q1, row 1 = q2.
        q = jnp.dot(w3_ref[...], h.astype(compute_dtype),
                    preferred_element_type=jnp.float32) + b3

        q1 = q[0:1, :]                        # (1, tb)
        q2 = q[1:2, :]                        # (1, tb)
        if q_type == "reward":
            out_ref[...] = jnp.minimum(q1, q2)      # lane-dense (1, tb) store
        else:  # "cost"
            out_ref[...] = jnp.maximum(q1, q2)

    return kernel


def pack_twinq_params(params, state_dim, compute_dtype):
    """Pack per-head PyTorch-style params into the fused, transposed form."""
    H = params["w1_q1"].shape[1]
    f32 = jnp.float32

    # W1: (in_dim, H) per head  ->  packed transposed (2H, in_dim), then split
    # into state / action column blocks (avoids any wrapper concat of inputs).
    w1T = jnp.concatenate([params["w1_q1"], params["w1_q2"]], axis=1).T
    w1sT = w1T[:, :state_dim].astype(compute_dtype)        # (2H, state_dim)
    w1aT = w1T[:, state_dim:].astype(compute_dtype)        # (2H, action_dim)

    # W2: block-diagonal (2H, 2H) so one matmul serves both heads.
    z = jnp.zeros((H, H), f32)
    w2T = jnp.concatenate(
        [jnp.concatenate([params["w2_q1"].T, z], axis=1),
         jnp.concatenate([z, params["w2_q2"].T], axis=1)],
        axis=0).astype(compute_dtype)                       # (2H, 2H)

    # W3: (H, 1) per head -> (2, 2H) with zero cross-head blocks.
    zr = jnp.zeros((1, H), f32)
    w3T = jnp.concatenate(
        [jnp.concatenate([params["w3_q1"].T, zr], axis=1),
         jnp.concatenate([zr, params["w3_q2"].T], axis=1)],
        axis=0).astype(compute_dtype)                       # (2, 2H)

    # All biases in one f32 buffer: columns [b1 | b2 | b3(padded)].
    b1 = jnp.concatenate([params["b1_q1"], params["b1_q2"]], axis=1).T  # (2H,1)
    b2 = jnp.concatenate([params["b2_q1"], params["b2_q2"]], axis=1).T  # (2H,1)
    b3 = jnp.concatenate([params["b3_q1"], params["b3_q2"]], axis=0)    # (2,1)
    b3 = jnp.pad(b3, ((0, 2 * H - 2), (0, 0)))                          # (2H,1)
    b_pack = jnp.concatenate([b1, b2, b3], axis=1).astype(f32)          # (2H,3)

    return dict(w1sT=w1sT, w1aT=w1aT, w2T=w2T, w3T=w3T, b_pack=b_pack)


def twinq_forward(state, action, params, *, tb=None, q_type="reward",
                  use_bf16=True):
    """state: (B, state_dim), action: (B, action_dim) -> (B,) float32."""
    if q_type not in ("reward", "cost"):
        raise ValueError("Invalid q function type")

    B, state_dim = state.shape
    action_dim = action.shape[1]
    compute_dtype = jnp.bfloat16 if use_bf16 else jnp.float32

    p = pack_twinq_params(params, state_dim, compute_dtype)
    H2 = p["w2T"].shape[0]                      # 2 * hidden_dim

    # Transpose so batch maps onto the 128-lane axis (layout plumbing only).
    stateT = state.T.astype(compute_dtype)      # (state_dim, B)
    actionT = action.T.astype(compute_dtype)    # (action_dim, B)

    # Batch tile: multiple of 128 on the lane axis when B is large, so the
    # grid has several "parallel" steps (DMA pipelining + v7x dual-TC
    # sharding). Edge blocks (B % tb != 0) are handled by Pallas.
    if tb is None:
        tb = 512 if B > 512 else B
    grid = (pl.cdiv(B, tb),)

    full = lambda shape: pl.BlockSpec(shape, lambda i: (0, 0))
    kernel = _make_twinq_kernel(q_type, compute_dtype)

    out2d = pl.pallas_call(
        kernel,
        out_shape=jax.ShapeDtypeStruct((1, B), jnp.float32),
        grid=grid,
        in_specs=[
            pl.BlockSpec((state_dim, tb), lambda i: (0, i)),   # state^T tile
            pl.BlockSpec((action_dim, tb), lambda i: (0, i)),  # action^T tile
            full((H2, state_dim)),                             # W1^T (state)
            full((H2, action_dim)),                            # W1^T (action)
            full((H2, H2)),                                    # W2^T block-diag
            full((2, H2)),                                     # W3^T packed
            full((H2, 3)),                                     # biases packed
        ],
        out_specs=pl.BlockSpec((1, tb), lambda i: (0, i)),     # lane-dense out
        compiler_params=pltpu.CompilerParams(
            dimension_semantics=("parallel",)),
    )(stateT, actionT, p["w1sT"], p["w1aT"], p["w2T"], p["w3T"], p["b_pack"])

    return out2d[0, :]        # Squeeze(-1)


def init_twinq_params(key, state_dim, action_dim, hidden_dim=32):
    """Deterministic PyTorch-Linear-style init (uniform +/- 1/sqrt(fan_in))."""
    in_dim = state_dim + action_dim
    dims = [in_dim, hidden_dim, hidden_dim, 1]
    params = {}
    for head in ("q1", "q2"):
        for layer, (di, do) in enumerate(zip(dims[:-1], dims[1:]), start=1):
            key, kw, kb = jax.random.split(key, 3)
            bound = 1.0 / (float(di) ** 0.5)
            params[f"w{layer}_{head}"] = jax.random.uniform(
                kw, (di, do), jnp.float32, -bound, bound)
            params[f"b{layer}_{head}"] = jax.random.uniform(
                kb, (1, do), jnp.float32, -bound, bound)
    return params


def twinq_reference(state, action, params, q_type="reward"):
    """Pure-JAX reference for correctness check (matches the PyTorch module)."""
    sa = jnp.concatenate([state, action], axis=1)

    def mlp(h, w1, b1, w2, b2, w3, b3):
        h = jnp.maximum(h @ w1 + b1, 0.0)
        h = jnp.maximum(h @ w2 + b2, 0.0)
        return (h @ w3 + b3)[:, 0]

    q1 = mlp(sa, params["w1_q1"], params["b1_q1"], params["w2_q1"],
             params["b2_q1"], params["w3_q1"], params["b3_q1"])
    q2 = mlp(sa, params["w1_q2"], params["b1_q2"], params["w2_q2"],
             params["b2_q2"], params["w3_q2"], params["b3_q2"])
    return jnp.minimum(q1, q2) if q_type == "reward" else jnp.maximum(q1, q2)


if __name__ == "__main__":
    state_dim, action_dim, hidden_dim, batch = 12, 4, 32, 256

    key = jax.random.PRNGKey(0)
    k_s, k_a, k_p = jax.random.split(key, 3)
    state = jax.random.normal(k_s, (batch, state_dim), jnp.float32)
    action = jax.random.normal(k_a, (batch, action_dim), jnp.float32)
    params = init_twinq_params(k_p, state_dim, action_dim, hidden_dim)

    ref_min = twinq_reference(state, action, params, "reward")
    ref_max = twinq_reference(state, action, params, "cost")

    # 1) f32 matmul path, single grid step, 'reward' (min) head combine.
    out_f32 = jax.block_until_ready(
        twinq_forward(state, action, params, q_type="reward", use_bf16=False))
    assert out_f32.shape == (batch,)
    assert jnp.allclose(out_f32, ref_min, atol=1e-4, rtol=1e-4)

    # 2) bf16 matmul path with tb=128 -> 2 grid steps (exercises batch tiling
    #    and the lane-dense tiled output store). Looser tolerance for bf16.
    out_bf16 = jax.block_until_ready(
        twinq_forward(state, action, params, tb=128, q_type="reward",
                      use_bf16=True))
    assert out_bf16.shape == (batch,)
    assert jnp.allclose(out_bf16, ref_min, atol=5e-2, rtol=5e-2)

    # 3) 'cost' (max) head combine, f32, tiled.
    out_cost = jax.block_until_ready(
        twinq_forward(state, action, params, tb=128, q_type="cost",
                      use_bf16=False))
    assert out_cost.shape == (batch,)
    assert jnp.allclose(out_cost, ref_max, atol=1e-4, rtol=1e-4)

    print("KERNEL_OK")
</pallas_src>

<mosaic_0001>
module attributes {stable_mosaic.version = 11 : i64} {
  func.func @kernel(%arg0: i32, %arg1: memref<12x256xf32, #tpu.memory_space<vmem>>, %arg2: memref<4x256xf32, #tpu.memory_space<vmem>>, %arg3: memref<64x12xf32, #tpu.memory_space<vmem>>, %arg4: memref<64x4xf32, #tpu.memory_space<vmem>>, %arg5: memref<64x64xf32, #tpu.memory_space<vmem>>, %arg6: memref<2x64xf32, #tpu.memory_space<vmem>>, %arg7: memref<64x3xf32, #tpu.memory_space<vmem>>, %arg8: memref<1x256xf32, #tpu.memory_space<vmem>>) attributes {dimension_semantics = [#tpu.dimension_semantics<parallel>], iteration_bounds = array<i64: 1>, scalar_prefetch = 0 : i64, scratch_operands = 0 : i64, tpu.core_type = #tpu.core_type<tc>, window_params = [{transform_indices = @transform_0, window_bounds = array<i64: 12, 256>}, {transform_indices = @transform_1, window_bounds = array<i64: 4, 256>}, {pipeline_mode = #tpu.pipeline_mode<synchronous>, transform_indices = @transform_2, window_bounds = array<i64: 64, 12>}, {pipeline_mode = #tpu.pipeline_mode<synchronous>, transform_indices = @transform_3, window_bounds = array<i64: 64, 4>}, {pipeline_mode = #tpu.pipeline_mode<synchronous>, transform_indices = @transform_4, window_bounds = array<i64: 64, 64>}, {pipeline_mode = #tpu.pipeline_mode<synchronous>, transform_indices = @transform_5, window_bounds = array<i64: 2, 64>}, {pipeline_mode = #tpu.pipeline_mode<synchronous>, transform_indices = @transform_6, window_bounds = array<i64: 64, 3>}, {transform_indices = @transform_7, window_bounds = array<i64: 1, 256>}]} {
    %c0 = arith.constant 0 : index
    %c0_0 = arith.constant 0 : index
    %0 = vector.load %arg7[%c0, %c0_0] : memref<64x3xf32, #tpu.memory_space<vmem>>, vector<64x1xf32>
    %c0_1 = arith.constant 0 : index
    %c1 = arith.constant 1 : index
    %1 = vector.load %arg7[%c0_1, %c1] : memref<64x3xf32, #tpu.memory_space<vmem>>, vector<64x1xf32>
    %c0_2 = arith.constant 0 : index
    %c2 = arith.constant 2 : index
    %2 = vector.load %arg7[%c0_2, %c2] : memref<64x3xf32, #tpu.memory_space<vmem>>, vector<2x1xf32>
    %c0_3 = arith.constant 0 : index
    %c0_4 = arith.constant 0 : index
    %3 = vector.load %arg3[%c0_3, %c0_4] : memref<64x12xf32, #tpu.memory_space<vmem>>, vector<64x12xf32>
    %c0_5 = arith.constant 0 : index
    %c0_6 = arith.constant 0 : index
    %4 = vector.load %arg1[%c0_5, %c0_6] : memref<12x256xf32, #tpu.memory_space<vmem>>, vector<12x256xf32>
    %cst = arith.constant dense<0.000000e+00> : vector<64x256xf32>
    %5 = tpu.matmul %3, %4, %cst {dimension_numbers = #tpu.dot_dimension_numbers<[1], [0], [0], [1], [0, 0, 1, 1], [], []>} : vector<64x12xf32>, vector<12x256xf32>, vector<64x256xf32> -> vector<64x256xf32>
    %c0_7 = arith.constant 0 : index
    %c0_8 = arith.constant 0 : index
    %6 = vector.load %arg4[%c0_7, %c0_8] : memref<64x4xf32, #tpu.memory_space<vmem>>, vector<64x4xf32>
    %c0_9 = arith.constant 0 : index
    %c0_10 = arith.constant 0 : index
    %7 = vector.load %arg2[%c0_9, %c0_10] : memref<4x256xf32, #tpu.memory_space<vmem>>, vector<4x256xf32>
    %cst_11 = arith.constant dense<0.000000e+00> : vector<64x256xf32>
    %8 = tpu.matmul %6, %7, %cst_11 {dimension_numbers = #tpu.dot_dimension_numbers<[1], [0], [0], [1], [0, 0, 1, 1], [], []>} : vector<64x4xf32>, vector<4x256xf32>, vector<64x256xf32> -> vector<64x256xf32>
    %9 = arith.addf %5, %8 : vector<64x256xf32>
    %10 = vector.broadcast %0 : vector<64x1xf32> to vector<64x256xf32>
    %11 = arith.addf %9, %10 : vector<64x256xf32>
    %cst_12 = arith.constant 0.000000e+00 : f32
    %12 = vector.broadcast %cst_12 : f32 to vector<64x256xf32>
    %13 = arith.maximumf %11, %12 : vector<64x256xf32>
    %c0_13 = arith.constant 0 : index
    %c0_14 = arith.constant 0 : index
    %14 = vector.load %arg5[%c0_13, %c0_14] : memref<64x64xf32, #tpu.memory_space<vmem>>, vector<64x64xf32>
    %cst_15 = arith.constant dense<0.000000e+00> : vector<64x256xf32>
    %15 = tpu.matmul %14, %13, %cst_15 {dimension_numbers = #tpu.dot_dimension_numbers<[1], [0], [0], [1], [0, 0, 1, 1], [], []>} : vector<64x64xf32>, vector<64x256xf32>, vector<64x256xf32> -> vector<64x256xf32>
    %16 = vector.broadcast %1 : vector<64x1xf32> to vector<64x256xf32>
    %17 = arith.addf %15, %16 : vector<64x256xf32>
    %cst_16 = arith.constant 0.000000e+00 : f32
    %18 = vector.broadcast %cst_16 : f32 to vector<64x256xf32>
    %19 = arith.maximumf %17, %18 : vector<64x256xf32>
    %c0_17 = arith.constant 0 : index
    %c0_18 = arith.constant 0 : index
    %20 = vector.load %arg6[%c0_17, %c0_18] : memref<2x64xf32, #tpu.memory_space<vmem>>, vector<2x64xf32>
    %cst_19 = arith.constant dense<0.000000e+00> : vector<2x256xf32>
    %21 = tpu.matmul %20, %19, %cst_19 {dimension_numbers = #tpu.dot_dimension_numbers<[1], [0], [0], [1], [0, 0, 1, 1], [], []>} : vector<2x64xf32>, vector<64x256xf32>, vector<2x256xf32> -> vector<2x256xf32>
    %22 = vector.broadcast %2 : vector<2x1xf32> to vector<2x256xf32>
    %23 = arith.addf %21, %22 : vector<2x256xf32>
    %24 = vector.extract_strided_slice %23 {offsets = [0, 0], sizes = [1, 256], strides = [1, 1]} : vector<2x256xf32> to vector<1x256xf32>
    %25 = vector.extract_strided_slice %23 {offsets = [1, 0], sizes = [1, 256], strides = [1, 1]} : vector<2x256xf32> to vector<1x256xf32>
    %26 = arith.minimumf %24, %25 : vector<1x256xf32>
    %c0_20 = arith.constant 0 : index
    %c0_21 = arith.constant 0 : index
    %27 = vector.load %arg8[%c0_20, %c0_21] : memref<1x256xf32, #tpu.memory_space<vmem>>, vector<1x256xf32>
    tpu.vector_store %arg8[%c0_20, %c0_21], %26 {strides = array<i32>} : memref<1x256xf32, #tpu.memory_space<vmem>>, vector<1x256xf32>,
    return
  }
  func.func @transform_0(%arg0: i32) -> (i32, i32) {
    %c0_i32 = arith.constant 0 : i32
    %c0_i32_0 = arith.constant 0 : i32
    return %c0_i32, %arg0 : i32, i32
  }
  func.func @transform_1(%arg0: i32) -> (i32, i32) {
    %c0_i32 = arith.constant 0 : i32
    %c0_i32_0 = arith.constant 0 : i32
    return %c0_i32, %arg0 : i32, i32
  }
  func.func @transform_2(%arg0: i32) -> (i32, i32) {
    %c0_i32 = arith.constant 0 : i32
    %c0_i32_0 = arith.constant 0 : i32
    %c0_i32_1 = arith.constant 0 : i32
    return %c0_i32, %c0_i32_0 : i32, i32
  }
  func.func @transform_3(%arg0: i32) -> (i32, i32) {
    %c0_i32 = arith.constant 0 : i32
    %c0_i32_0 = arith.constant 0 : i32
    %c0_i32_1 = arith.constant 0 : i32
    return %c0_i32, %c0_i32_0 : i32, i32
  }
  func.func @transform_4(%arg0: i32) -> (i32, i32) {
    %c0_i32 = arith.constant 0 : i32
    %c0_i32_0 = arith.constant 0 : i32
    %c0_i32_1 = arith.constant 0 : i32
    return %c0_i32, %c0_i32_0 : i32, i32
  }
  func.func @transform_5(%arg0: i32) -> (i32, i32) {
    %c0_i32 = arith.constant 0 : i32
    %c0_i32_0 = arith.constant 0 : i32
    %c0_i32_1 = arith.constant 0 : i32
    return %c0_i32, %c0_i32_0 : i32, i32
  }
  func.func @transform_6(%arg0: i32) -> (i32, i32) {
    %c0_i32 = arith.constant 0 : i32
    %c0_i32_0 = arith.constant 0 : i32
    %c0_i32_1 = arith.constant 0 : i32
    return %c0_i32, %c0_i32_0 : i32, i32
  }
  func.func @transform_7(%arg0: i32) -> (i32, i32) {
    %c0_i32 = arith.constant 0 : i32
    %c0_i32_0 = arith.constant 0 : i32
    return %c0_i32, %arg0 : i32, i32
  }
}

</mosaic_0001>

<bundles_post_ra>
// kernel: tpu_custom_call.1
= control target key start
LH: loop header
LB: loop body
LE: loop exit
PB: predicated region body
PF: predicated region fallthrough
CT: control target
= control target key end

     0   :  { %vm84_vm0 = vcmask 1043456   ;;  %v858_v2 = vmov 0.0   ;;  %vm59_vm1 = vcmask 31744   ;;  %vm859_vm2 = vmmov 1   ;;  %s1095_s0 = inlined_call_operand.vmem [shape: f32[12,256], index: 0, kind: input, shape index: {}]   ;;  %s1096_s1 = inlined_call_operand.vmem [shape: f32[4,256], index: 1, kind: input, shape index: {}]   ;;  %s1097_s2 = inlined_call_operand.vmem [shape: f32[64,12], index: 2, kind: input, shape index: {}]   ;;  %s1098_s3 = inlined_call_operand.vmem [shape: f32[64,4], index: 3, kind: input, shape index: {}]   ;;  %s1099_s4 = inlined_call_operand.vmem [shape: f32[64,64], index: 4, kind: input, shape index: {}]   ;;  %s1100_s5 = inlined_call_operand.vmem [shape: f32[2,64], index: 5, kind: input, shape index: {}]   ;;  %s1101_s6 = inlined_call_operand.vmem [shape: f32[64,3], index: 6, kind: input, shape index: {}]   ;;  %s1102_s7 = inlined_call_operand.hbm [shape: f32[1,256], index: 7, kind: output, shape index: {}]  }
   0x1   :  { %v56_v0 = vld [vmem:[%s1096_s1] sm:$0xff]  ;;  %153 = vmatprep.mubr.f32.mxu0 %v858_v2  ;;  %v45_v3 = vld [vmem:[%s1095_s0 + $0x8] sm:$0xff]  ;;  %v47_v4 = vld [vmem:[%s1095_s0 + $0x18] sm:$0xf]  ;;  %547 = vmatprep.mubr.f32.mxu1 %v858_v2  ;;  %v860_v10 = vmov 0  }
   0x2   :  { %v58_v1 = vcombine.high %v56_v0, %v56_v0  ;;  %v44_v5 = vld [vmem:[%s1095_s0] sm:$0xff]  ;;  %v766_v7 = vpack.c.bf16 %v47_v4, %v45_v3  ;;  %vm767_vm3 = vmpackc.low %vm84_vm0, %vm859_vm2  ;;  %v46_v8 = vld [vmem:[%s1095_s0 + $0x10] sm:$0xf]  ;;  %827 = vset.pattern.permute.xlu0 %v860_v10  ;;  %828 = vset.pattern.permute.xlu1 %v860_v10 }
   0x3   :  { %v48_v6 = vld [vmem:[%s1098_s3] sm:$0xff]  ;;  %v769_v9 = vpack.c.bf16 %v46_v8, %v44_v5  ;;  %v49_v11 = vld [vmem:[%s1098_s3 + $0x8] sm:$0xff]  ;;  %v942_v13 = vld [vmem:[%s1101_s6 + $0x10] sm:$0xff] }
   0x4   :  { %737 = vmatprep.subr.msk.mxu0 %vm84_vm0, %v58_v1  ;;  %v936_v12 = vld [vmem:[%s1101_s6] sm:$0xff]  ;;  %v28_v14 = vld [vmem:[%s1101_s6 + $0x8] sm:$0xff]  ;;  %358 = vperm.xlu1 %828, %v942_v13   ;;  %v50_v15 = vld [vmem:[%s1098_s3 + $0x10] sm:$0xff] }
   0x5   :  { %738 = vmatpush1.msk.msra.mxu0 %vm84_vm0, %v56_v0  ;;  %348 = vperm.xlu0 %827, %v936_v12   ;;  %v30_v16 = vld [vmem:[%s1101_s6 + $0x18] sm:$0xff] }
   0x6   :  { %739 = vmatmul.mubr.msk.f32.vlgmr.msra.gmra.mrb[0].mxu0 %vm59_vm1, %v48_v6  ;;  %768 = vmatprep.subr.msk.bf16.mxu0 %vm767_vm3, %v766_v7 }
   0x7   :  { %159 = vmatprep.mubr.f32.mxu0 %v858_v2  ;;  %771 = vmatpush1.bf16.msk.msra.mxu0 %vm767_vm3, %v769_v9 }
   0xa   :  { %740 = vmatmul.mubr.msk.f32.gmra.mrb[2].mxu0 %vm59_vm1, %v49_v11 }
   0xb   :  { %165 = vmatprep.mubr.f32.mxu0 %v858_v2 }
   0xc   :  { %12 = vsyncpa [#allocation3], 0  ;;  %353 = vperm.xlu0 %827, %v28_v14   ;;  %363 = vperm.xlu1 %828, %v30_v16   ;;  %v31_v17 = vld [vmem:[%s1101_s6 + $0x20] sm:$0xff]  ;;  %v51_v18 = vld [vmem:[%s1098_s3 + $0x18] sm:$0xff]  ;;  %vm202_vm4 = vcmask 97280   ;;  %v861_v34 = vmov 1  }
   0xd   :  { %v32_v19 = vld [vmem:[%s1101_s6 + $0x28] sm:$0xff]  ;;  %v33_v20 = vld [vmem:[%s1101_s6 + $0x30] sm:$0xff]  ;;  %v52_v21 = vld [vmem:[%s1098_s3 + $0x20] sm:$0xff]  ;;  %vm458_vm5 = vcmask 523264   ;;  %s864_s22 = smov [#allocation2]  }
   0xe   :  { %741 = vmatmul.mubr.msk.f32.gmra.mrb[4].mxu0 %vm59_vm1, %v50_v15  ;;  %v34_v22 = vld [vmem:[%s1101_s6 + $0x38] sm:$0xff]  ;;  %v53_v23 = vld [vmem:[%s1098_s3 + $0x28] sm:$0xff]  ;;  %v54_v24 = vld [vmem:[%s1098_s3 + $0x30] sm:$0xff] }
   0xf   :  { %171 = vmatprep.mubr.f32.mxu0 %v858_v2  ;;  %v55_v25 = vld [vmem:[%s1098_s3 + $0x38] sm:$0xff]  ;;  %v36_v26 = vld [vmem:[%s1097_s2] sm:$0xff]  ;;  %v37_v27 = vld [vmem:[%s1097_s2 + $0x8] sm:$0xff] }
  0x10   :  { %368 = vperm.xlu0 %827, %v31_v17   ;;  %373 = vperm.xlu1 %828, %v32_v19   ;;  %v38_v28 = vld [vmem:[%s1097_s2 + $0x10] sm:$0xff]  ;;  %v39_v29 = vld [vmem:[%s1097_s2 + $0x18] sm:$0xff]  ;;  %v40_v30 = vld [vmem:[%s1097_s2 + $0x20] sm:$0xff] }
  0x11   :  { %v41_v31 = vld [vmem:[%s1097_s2 + $0x28] sm:$0xff]  ;;  %v42_v32 = vld [vmem:[%s1097_s2 + $0x30] sm:$0xff]  ;;  %v43_v33 = vld [vmem:[%s1097_s2 + $0x38] sm:$0xff] }
  0x12   :  { %742 = vmatmul.mubr.msk.f32.gmra.mrb[6].mxu0 %vm59_vm1, %v51_v18 }
  0x13   :  { %177 = vmatprep.mubr.f32.mxu0 %v858_v2 }
  0x14   :  { %378 = vperm.xlu0 %827, %v33_v20   ;;  %383 = vperm.xlu1 %828, %v34_v22  }
  0x16   :  { %743 = vmatmul.mubr.msk.f32.gmra.mrb[8].mxu0 %vm59_vm1, %v52_v21 }
  0x17   :  { %183 = vmatprep.mubr.f32.mxu0 %v858_v2 }
  0x18   :  { %830 = vset.pattern.permute.xlu1 %v861_v34  ;;  %829 = vset.pattern.permute.xlu0 %v861_v34 }
  0x19   :  { %431 = vperm.xlu1 %830, %v28_v14   ;;  %427 = vperm.xlu0 %829, %v936_v12  }
  0x1a   :  { %744 = vmatmul.mubr.msk.f32.gmra.mrb[10].mxu0 %vm59_vm1, %v53_v23 }
  0x1b   :  { %189 = vmatprep.mubr.f32.mxu0 %v858_v2 }
  0x1d   :  { %435 = vperm.xlu1 %830, %v942_v13   ;;  %439 = vperm.xlu0 %829, %v30_v16  }
  0x1e   :  { %745 = vmatmul.mubr.msk.f32.gmra.mrb[12].mxu0 %vm59_vm1, %v54_v24 }
  0x1f   :  { %195 = vmatprep.mubr.f32.mxu0 %v858_v2 }
  0x21   :  { %443 = vperm.xlu1 %830, %v31_v17   ;;  %447 = vperm.xlu0 %829, %v32_v19  }
  0x22   :  { %746 = vmatmul.mubr.msk.f32.gmra.mrb[14].mxu0 %vm59_vm1, %v55_v25 }
  0x23   :  { %297 = vmatprep.mubr.f32.mxu0 %v858_v2 }
  0x25   :  { %451 = vperm.xlu1 %830, %v33_v20   ;;  %455 = vperm.xlu0 %829, %v34_v22  }
  0x26   :  { %749 = vmatmul.mubr.msk.f32.vlgmr.msra.gmra.mrb[0].mxu0 %vm202_vm4, %v36_v26 }
  0x27   :  { %303 = vmatprep.mubr.f32.mxu0 %v858_v2 }
  0x2a   :  { %750 = vmatmul.mubr.msk.f32.gmra.mrb[2].mxu0 %vm202_vm4, %v37_v27 }
  0x2b   :  { %309 = vmatprep.mubr.f32.mxu0 %v858_v2 }
  0x2e   :  { %751 = vmatmul.mubr.msk.f32.gmra.mrb[4].mxu0 %vm202_vm4, %v38_v28 }
  0x2f   :  { %315 = vmatprep.mubr.f32.mxu0 %v858_v2 }
  0x32   :  { %752 = vmatmul.mubr.msk.f32.gmra.mrb[6].mxu0 %vm202_vm4, %v39_v29 }
  0x33   :  { %321 = vmatprep.mubr.f32.mxu0 %v858_v2 }
  0x36   :  { %753 = vmatmul.mubr.msk.f32.gmra.mrb[8].mxu0 %vm202_vm4, %v40_v30 }
  0x37   :  { %327 = vmatprep.mubr.f32.mxu0 %v858_v2 }
  0x3a   :  { %754 = vmatmul.mubr.msk.f32.gmra.mrb[10].mxu0 %vm202_vm4, %v41_v31 }
  0x3b   :  { %333 = vmatprep.mubr.f32.mxu0 %v858_v2 }
  0x3e   :  { %755 = vmatmul.mubr.msk.f32.gmra.mrb[12].mxu0 %vm202_vm4, %v42_v32 }
  0x3f   :  { %339 = vmatprep.mubr.f32.mxu0 %v858_v2 }
  0x42   :  { %756 = vmatmul.mubr.msk.f32.gmra.mrb[14].mxu0 %vm202_vm4, %v43_v33 }
  0x83   :  { %v359_v45 = vpop.permute.xlu1 %358 }
  0x84   :  { %v349_v35 = vpop.permute.xlu0 %348 }
  0x8b   :  { %v354_v38 = vpop.permute.xlu0 %353  ;;  %v364_v56 = vpop.permute.xlu1 %363 }
  0x8f   :  { %v369_v5 = vpop.permute.xlu0 %368  ;;  %v374_v8 = vpop.permute.xlu1 %373 }
  0x93   :  { %v379_v21 = vpop.permute.xlu0 %378  ;;  %v384_v24 = vpop.permute.xlu1 %383 }
  0xf9   :  { %v299_v36 = vpop.f32.mrb[0].mxu0 }
  0xfa   :  { %v301_v37 = vpop.f32.mrb[1].mxu0  ;;  %v386_v39 = vadd.f32 %v349_v35, %v299_v36  ;;  %v418_v36 = vld [vmem:[%s1099_s4] sm:$0xff] }
  0xfb   :  { %v387_v40 = vadd.f32 %v349_v35, %v301_v37  ;;  %v419_v37 = vld [vmem:[%s1099_s4 + $0x8] sm:$0xff] }
  0xfc   :  { %v402_v46 = vmax.f32 %v386_v39, 0.0  ;;  %v421_v39 = vld [vmem:[%s1099_s4 + $0x18] sm:$0xff] }
  0xfd   :  { %v305_v41 = vpop.f32.mrb[2].mxu0  ;;  %v403_v48 = vmax.f32 %v387_v40, 0.0  ;;  %v422_v40 = vld [vmem:[%s1099_s4 + $0x20] sm:$0xff] }
  0xfe   :  { %v388_v42 = vadd.f32 %v354_v38, %v305_v41  ;;  %v307_v43 = vpop.f32.mrb[3].mxu0  ;;  %v423_v41 = vld [vmem:[%s1099_s4 + $0x28] sm:$0xff] }
  0xff   :  { %v389_v44 = vadd.f32 %v354_v38, %v307_v43  ;;  %v420_v38 = vld [vmem:[%s1099_s4 + $0x10] sm:$0xff]  ;;  %v425_v43 = vld [vmem:[%s1099_s4 + $0x38] sm:$0xff] }
 0x100   :  { %v404_v47 = vmax.f32 %v388_v42, 0.0  ;;  %v424_v42 = vld [vmem:[%s1099_s4 + $0x30] sm:$0xff] }
 0x101   :  { %v405_v49 = vmax.f32 %v389_v44, 0.0  ;;  %v311_v50 = vpop.f32.mrb[4].mxu0  ;;  %v35_v44 = vld [vmem:[%s1101_s6] sm:$0x3] }
 0x102   :  { %v313_v51 = vpop.f32.mrb[5].mxu0  ;;  %v774_v52 = vpack.c.bf16 %v404_v47, %v402_v46  ;;  %v390_v54 = vadd.f32 %v359_v45, %v311_v50  ;;  %v428_v46 = vpop.permute.xlu0 %427 }
 0x103   :  { %v772_v53 = vpack.c.bf16 %v405_v49, %v403_v48  ;;  %v391_v55 = vadd.f32 %v359_v45, %v313_v51  ;;  %v862_v45 = vmov 2   ;;  %v432_v49 = vpop.permute.xlu1 %431 }
 0x104   :  { %v406_v61 = vmax.f32 %v390_v54, 0.0  ;;  %831 = vset.pattern.permute.xlu1 %v862_v45  ;;  %832 = vset.pattern.permute.xlu0 %v862_v45 }
 0x105   :  { %v317_v57 = vpop.f32.mrb[6].mxu0  ;;  %773 = vmatprep.subr.bf16.mxu1 %v772_v53  ;;  %v407_v63 = vmax.f32 %v391_v55, 0.0  ;;  %615 = vperm.xlu1 %831, %v35_v44  }
 0x106   :  { %v392_v58 = vadd.f32 %v364_v56, %v317_v57  ;;  %v319_v59 = vpop.f32.mrb[7].mxu0  ;;  %775 = vmatpush1.bf16.msra.mxu1 %v774_v52 }
 0x107   :  { %v393_v60 = vadd.f32 %v364_v56, %v319_v59  ;;  %v436_v57 = vpop.permute.xlu1 %435 }
 0x108   :  { %v408_v62 = vmax.f32 %v392_v58, 0.0 }
 0x109   :  { %v409_v0 = vmax.f32 %v393_v60, 0.0  ;;  %v323_v1 = vpop.f32.mrb[8].mxu0 }
 0x10a   :  { %v778_v3 = vpack.c.bf16 %v408_v62, %v406_v61  ;;  %v325_v4 = vpop.f32.mrb[9].mxu0  ;;  %v394_v7 = vadd.f32 %v369_v5, %v323_v1  ;;  %v440_v1 = vpop.permute.xlu0 %439 }
 0x10b   :  { %v776_v6 = vpack.c.bf16 %v409_v0, %v407_v63  ;;  %v395_v9 = vadd.f32 %v369_v5, %v325_v4 }
 0x10c   :  { %v410_v14 = vmax.f32 %v394_v7, 0.0 }
 0x10d   :  { %v329_v10 = vpop.f32.mrb[10].mxu0  ;;  %777 = vmatprep.subr.bf16.mxu1 %v776_v6  ;;  %v411_v16 = vmax.f32 %v395_v9, 0.0 }
 0x10e   :  { %v396_v11 = vadd.f32 %v374_v8, %v329_v10  ;;  %v331_v12 = vpop.f32.mrb[11].mxu0  ;;  %779 = vmatpush1.bf16.msra.mxu1 %v778_v3 }
 0x10f   :  { %v397_v13 = vadd.f32 %v374_v8, %v331_v12 }
 0x110   :  { %v412_v15 = vmax.f32 %v396_v11, 0.0 }
 0x111   :  { %v413_v17 = vmax.f32 %v397_v13, 0.0  ;;  %v335_v18 = vpop.f32.mrb[12].mxu0 }
 0x112   :  { %v782_v19 = vpack.c.bf16 %v412_v15, %v410_v14  ;;  %v337_v20 = vpop.f32.mrb[13].mxu0  ;;  %v398_v23 = vadd.f32 %v379_v21, %v335_v18  ;;  %v444_v15 = vpop.permute.xlu1 %443 }
 0x113   :  { %v780_v22 = vpack.c.bf16 %v413_v17, %v411_v16  ;;  %v399_v25 = vadd.f32 %v379_v21, %v337_v20  ;;  %v448_v18 = vpop.permute.xlu0 %447 }
 0x114   :  { %v414_v30 = vmax.f32 %v398_v23, 0.0 }
 0x115   :  { %v341_v26 = vpop.f32.mrb[14].mxu0  ;;  %781 = vmatprep.subr.bf16.mxu1 %v780_v22  ;;  %v415_v32 = vmax.f32 %v399_v25, 0.0 }
 0x116   :  { %v400_v27 = vadd.f32 %v384_v24, %v341_v26  ;;  %v343_v28 = vpop.f32.mrb[15].mxu0  ;;  %783 = vmatpush1.bf16.msra.mxu1 %v782_v19 }
 0x117   :  { %v401_v29 = vadd.f32 %v384_v24, %v343_v28 }
 0x118   :  { %v416_v31 = vmax.f32 %v400_v27, 0.0 }
 0x119   :  { %v417_v33 = vmax.f32 %v401_v29, 0.0 }
 0x11a   :  { %v786_v34 = vpack.c.bf16 %v416_v31, %v414_v30  ;;  %v452_v31 = vpop.permute.xlu1 %451 }
 0x11b   :  { %v784_v35 = vpack.c.bf16 %v417_v33, %v415_v32 }
 0x11d   :  { %785 = vmatprep.subr.bf16.mxu1 %v784_v35 }
 0x11e   :  { %787 = vmatpush1.bf16.msra.mxu1 %v786_v34  ;;  %v456_v34 = vpop.permute.xlu0 %455 }
 0x121   :  { %757 = vmatmul.mubr.msk.f32.vlgmr.msra.gmra.mrb[0].mxu1 %vm458_vm5, %v418_v36 }
 0x122   :  { %553 = vmatprep.mubr.f32.mxu1 %v858_v2 }
 0x125   :  { %758 = vmatmul.mubr.msk.f32.gmra.mrb[2].mxu1 %vm458_vm5, %v419_v37 }
 0x126   :  { %559 = vmatprep.mubr.f32.mxu1 %v858_v2 }
 0x129   :  { %759 = vmatmul.mubr.msk.f32.gmra.mrb[4].mxu1 %vm458_vm5, %v420_v38 }
 0x12a   :  { %565 = vmatprep.mubr.f32.mxu1 %v858_v2 }
 0x12d   :  { %760 = vmatmul.mubr.msk.f32.gmra.mrb[6].mxu1 %vm458_vm5, %v421_v39 }
 0x12e   :  { %571 = vmatprep.mubr.f32.mxu1 %v858_v2 }
 0x131   :  { %761 = vmatmul.mubr.msk.f32.gmra.mrb[8].mxu1 %vm458_vm5, %v422_v40 }
 0x132   :  { %577 = vmatprep.mubr.f32.mxu1 %v858_v2 }
 0x135   :  { %762 = vmatmul.mubr.msk.f32.gmra.mrb[10].mxu1 %vm458_vm5, %v423_v41 }
 0x136   :  { %583 = vmatprep.mubr.f32.mxu1 %v858_v2 }
 0x139   :  { %763 = vmatmul.mubr.msk.f32.gmra.mrb[12].mxu1 %vm458_vm5, %v424_v42 }
 0x13a   :  { %589 = vmatprep.mubr.f32.mxu1 %v858_v2 }
 0x13d   :  { %764 = vmatmul.mubr.msk.f32.gmra.mrb[14].mxu1 %vm458_vm5, %v425_v43 }
 0x13e   :  { %685 = vmatprep.mubr.f32.mxu1 %v858_v2 }
 0x1f4   :  { %v549_v47 = vpop.f32.mrb[0].mxu1 }
 0x1f5   :  { %v551_v48 = vpop.f32.mrb[1].mxu1  ;;  %v550_v50 = vadd.f32 %v549_v47, %v428_v46  ;;  %v616_v47 = vpop.permute.xlu1 %615 }
 0x1f6   :  { %v552_v51 = vadd.f32 %v551_v48, %v428_v46  ;;  %v612_v46 = vld [vmem:[%s1100_s5] sm:$0x3]  ;;  %v863_v48 = vmov 1966171168   ;;  %s729_s5 = sshll.u32 %s864_s22, 4  ;;  %s730_s5 = int_to_ptr.vmem [resolvable:$true] %s729_s5 }
 0x1f7   :  { %v596_v56 = vmax.f32 %v550_v50, 0.0  ;;  %v706_v50 = vlaneseq  ;;  %s834_s23 = scalar_lea.vmem %s730_s5, 32  ;;  %p839_p1 = scmp.lt.s32.totalorder %s730_s5, %s730_s5 }
 0x1f8   :  { %v555_v52 = vpop.f32.mrb[2].mxu1  ;;  %v597_v58 = vmax.f32 %v552_v51, 0.0  ;;  %p835_p0 = scmp.ne.s32.totalorder %s730_s5, %s834_s23  ;;  %p840_p2 = scmp.lt.s32.totalorder %s834_s23, %s834_s23 }
 0x1f9   :  { %v556_v53 = vadd.f32 %v555_v52, %v432_v49  ;;  %v557_v54 = vpop.f32.mrb[3].mxu1  ;;  %vm720_vm6 = vcmp.lt.s32.totalorder %v706_v50, 256 }
 0x1fa   :  { %v558_v55 = vadd.f32 %v557_v54, %v432_v49  ;;  %v704_v49 = vunpack.c.l.s4 %v863_v48  ;;  %p841_p3 = por %p840_p2, %p839_p1 }
 0x1fb   :  { %v598_v2 = vmax.f32 %v556_v53, 0.0 }
 0x1fc   :  { %v599_v59 = vmax.f32 %v558_v55, 0.0  ;;  %v561_v60 = vpop.f32.mrb[4].mxu1  ;;  %v705_v55 = vunpack.c.0.s8 %v704_v49  ;;  %p842_p4 = pnand %p841_p3, %p835_p0 }
 0x1fd   :  { %v790_v61 = vpack.c.bf16 %v598_v2, %v596_v56  ;;  %v563_v62 = vpop.f32.mrb[5].mxu1  ;;  %v562_v0 = vadd.f32 %v561_v60, %v436_v57  ;;  %v707_v56 = vshrl.u32 %v706_v50, 7 }
 0x1fe   :  { %v788_v63 = vpack.c.bf16 %v599_v59, %v597_v58  ;;  %v564_v3 = vadd.f32 %v563_v62, %v436_v57 }
 0x1ff   :  { %v600_v8 = vmax.f32 %v562_v0, 0.0  ;;  %v708_v60 = vsub.s32 %v705_v55, %v707_v56 }
 0x200   :  { %v567_v4 = vpop.f32.mrb[6].mxu1  ;;  %789 = vmatprep.subr.bf16.mxu1 %v788_v63  ;;  %v601_v10 = vmax.f32 %v564_v3, 0.0 }
 0x201   :  { %v568_v5 = vadd.f32 %v567_v4, %v440_v1  ;;  %v569_v6 = vpop.f32.mrb[7].mxu1  ;;  %791 = vmatpush1.bf16.msra.mxu1 %v790_v61 }
 0x202   :  { %v570_v7 = vadd.f32 %v569_v6, %v440_v1 }
 0x203   :  { %v602_v9 = vmax.f32 %v568_v5, 0.0 }
 0x204   :  { %v603_v11 = vmax.f32 %v570_v7, 0.0  ;;  %v573_v12 = vpop.f32.mrb[8].mxu1 }
 0x205   :  { %v794_v13 = vpack.c.bf16 %v602_v9, %v600_v8  ;;  %v575_v14 = vpop.f32.mrb[9].mxu1  ;;  %v574_v17 = vadd.f32 %v573_v12, %v444_v15 }
 0x206   :  { %v792_v16 = vpack.c.bf16 %v603_v11, %v601_v10  ;;  %v576_v19 = vadd.f32 %v575_v14, %v444_v15 }
 0x207   :  { %v604_v24 = vmax.f32 %v574_v17, 0.0 }
 0x208   :  { %v579_v20 = vpop.f32.mrb[10].mxu1  ;;  %793 = vmatprep.subr.bf16.mxu1 %v792_v16  ;;  %v605_v26 = vmax.f32 %v576_v19, 0.0 }
 0x209   :  { %v580_v21 = vadd.f32 %v579_v20, %v448_v18  ;;  %v581_v22 = vpop.f32.mrb[11].mxu1  ;;  %795 = vmatpush1.bf16.msra.mxu1 %v794_v13 }
 0x20a   :  { %v582_v23 = vadd.f32 %v581_v22, %v448_v18 }
 0x20b   :  { %v606_v25 = vmax.f32 %v580_v21, 0.0 }
 0x20c   :  { %v607_v27 = vmax.f32 %v582_v23, 0.0  ;;  %v585_v28 = vpop.f32.mrb[12].mxu1 }
 0x20d   :  { %v798_v29 = vpack.c.bf16 %v606_v25, %v604_v24  ;;  %v587_v30 = vpop.f32.mrb[13].mxu1  ;;  %v586_v33 = vadd.f32 %v585_v28, %v452_v31 }
 0x20e   :  { %v796_v32 = vpack.c.bf16 %v607_v27, %v605_v26  ;;  %v588_v35 = vadd.f32 %v587_v30, %v452_v31 }
 0x20f   :  { %v608_v40 = vmax.f32 %v586_v33, 0.0 }
 0x210   :  { %v591_v36 = vpop.f32.mrb[14].mxu1  ;;  %797 = vmatprep.subr.bf16.mxu1 %v796_v32  ;;  %v609_v42 = vmax.f32 %v588_v35, 0.0 }
 0x211   :  { %v592_v37 = vadd.f32 %v591_v36, %v456_v34  ;;  %v593_v38 = vpop.f32.mrb[15].mxu1  ;;  %799 = vmatpush1.bf16.msra.mxu1 %v798_v29 }
 0x212   :  { %v594_v39 = vadd.f32 %v593_v38, %v456_v34 }
 0x213   :  { %v610_v41 = vmax.f32 %v592_v37, 0.0 }
 0x214   :  { %v611_v43 = vmax.f32 %v594_v39, 0.0 }
 0x215   :  { %v802_v44 = vpack.c.bf16 %v610_v41, %v608_v40 }
 0x216   :  { %v800_v45 = vpack.c.bf16 %v611_v43, %v609_v42 }
 0x218   :  { %801 = vmatprep.subr.bf16.mxu1 %v800_v45 }
 0x219   :  { %803 = vmatpush1.bf16.msra.mxu1 %v802_v44 }
 0x21c   :  { %765 = vmatmul.mubr.msk.f32.vlgmr.msra.gmra.mrb[16].mxu1 %vm458_vm5, %v612_v46 }
 0x2ef   :  { %v687_v51 = vpop.f32.mrb[16].mxu1 }
 0x2f0   :  { %v688_v52 = vadd.f32 %v687_v51, %v616_v47  ;;  %v689_v53 = vpop.f32.mrb[17].mxu1 }
 0x2f1   :  { %v690_v54 = vadd.f32 %v689_v53, %v616_v47 }
 0x2f2   :  { %v694_v2 = vrot.slane %v688_v52, 1 }
 0x2f3   :  { %v695_v57 = vrot.slane %v690_v54, 1 }
 0x2f4   :  { %v698_v58 = vmin.f32 %v688_v52, %v694_v2 }
 0x2f5   :  { %v699_v59 = vmin.f32 %v690_v54, %v695_v57 }
 0x2f7   :  { %v702_v61 = vcombine.low %v698_v58, %v699_v59 }
 0x2f9   :  { %v709_v62 = vrot.slane %v702_v61, %v708_v60 }
 0x2fb   :  { %v716_v63 = vrot.slane %v709_v62, %v708_v60 }
 0x2fd   :  { %722 = vst.msk [vmem:[#allocation2] sm:$0x3] %vm720_vm6, %v716_v63 }
 0x2fe   :  { %845 = shalt.err (!%p842_p4)
}
 0x2ff   :  { %s846_s26 = scalar_lea.hbm %s1102_s7, 32 }
 0x300   :  { %p847_p5 = scmp.ne.s32.totalorder %s1102_s7, %s846_s26  ;;  %p850_p6 = scmp.lt.u32.totalorder %s846_s26, %s1102_s7 }
 0x302   :  { %p852_p7 = pnand %p850_p6, %p847_p5 }
 0x304   :  { %855 = shalt.err (!%p852_p7)
}
 0x305   :  { %732 = dma.vmem_to_hbm [thread:$0]  %s730_s5, 32, %s1102_s7, [#allocation3]  }
 0x306   :  { %856 = dma.done.wait [#allocation3], 32  }
 0x307   :  { %857 = vsyncadd [#allocation3], 4294967264 }
 0x308   :  { %736 = vsyncpa [#allocation3], 1 }

</bundles_post_ra>
